<compile_context>
chip_gen: v7x
topology: tpu7x:2x2x1
jax: 0.10.0
libtpu: 0.0.40
codegen_flags: <defaults>
</compile_context>

<pallas_src>
import jax
import jax.numpy as jnp
from jax import lax
from jax.experimental import pallas as pl
from jax.experimental.pallas import tpu as pltpu


_VMEM_LIMIT = 32 * 1024 * 1024   # explicit scoped-VMEM limit; safe on v5e/v6e/v7x


def _divisors(n):
    return [d for d in range(1, n + 1) if n % d == 0]


# ----------------------------- MaxPooling mode -----------------------------

def _maxpool_kernel(x_ref, o_ref):
    # x_ref: (TB, THO, 2, Wo, 2)  -- 2x2 windows from a free NCHW reshape.
    # o_ref: (TB, THO, Wo)
    x = x_ref[...]
    # H-direction: pure VPU elementwise max of two slices (no cross-lane work).
    hmax = jnp.maximum(x[:, :, 0], x[:, :, 1])          # (TB, THO, Wo, 2)
    # W-direction: single 2-wide reduce over the trailing window dim.
    o_ref[...] = jnp.max(hmax, axis=-1)                 # (TB, THO, Wo)


def _pick_maxpool_tiles(nc, ho, wo, itemsize):
    # Padded-VMEM estimate for one input block (trailing window dim of size 2
    # is lane-padded); keep a single block <= ~6 MiB so double-buffered
    # in+out blocks stay well inside the 32 MiB scoped limit on all TPU
    # generations (incl. v7x's 64 MiB physical VMEM).
    def in_block_bytes(tb, tho):
        return tb * tho * 2 * (-(-wo // 8) * 8) * 128 * max(itemsize, 4)

    budget = 6 * 1024 * 1024
    # Output block's second-minor dim is THO -> must be a multiple of 8 or full.
    tho_opts = [d for d in _divisors(ho) if d == ho or d % 8 == 0]
    best, best_rows = (1, min(tho_opts)), 0
    for tho in tho_opts:
        for tb in _divisors(nc):
            if in_block_bytes(tb, tho) <= budget and tb * tho > best_rows:
                best, best_rows = (tb, tho), tb * tho
    return best


def maxpool2d_2x2(x_nchw):
    n, c, h, w = x_nchw.shape
    ho, wo = h // 2, w // 2
    if h % 2 or w % 2:                                   # PyTorch floor behaviour
        x_nchw = x_nchw[:, :, :2 * ho, :2 * wo]
    nc = n * c
    x = x_nchw.reshape(nc, ho, 2, wo, 2)                 # contiguous -> free
    tb, tho = _pick_maxpool_tiles(nc, ho, wo, x.dtype.itemsize)

    out = pl.pallas_call(
        _maxpool_kernel,
        out_shape=jax.ShapeDtypeStruct((nc, ho, wo), x.dtype),
        grid=(nc // tb, ho // tho),
        in_specs=[pl.BlockSpec((tb, tho, 2, wo, 2),
                               lambda i, j: (i, j, 0, 0, 0))],
        out_specs=pl.BlockSpec((tb, tho, wo), lambda i, j: (i, j, 0)),
        compiler_params=pltpu.CompilerParams(
            dimension_semantics=("parallel", "parallel"),
            vmem_limit_bytes=_VMEM_LIMIT),
    )(x)
    return out.reshape(n, c, ho, wo)


# -------------------------------- Conv mode --------------------------------

def _conv_gemm_kernel(p_ref, w_ref, b_ref, o_ref):
    # p_ref: (TM, K) patch tile; w_ref: (K, Cout) weights (block index is
    # constant across the M sweep -> fetched once, stays VMEM-resident);
    # b_ref: (1, Cout).
    acc = jnp.dot(p_ref[...], w_ref[...], preferred_element_type=jnp.float32)
    o_ref[...] = (acc + b_ref[...].astype(jnp.float32)).astype(o_ref.dtype)


def _pick_tm(m, k, itemsize):
    kp = max(-(-k // 128) * 128, 128)
    budget = 4 * 1024 * 1024
    cands = sorted(d for d in _divisors(m) if d % 8 == 0 or d == m)
    fitting = [d for d in cands if d <= 1024 and d * kp * itemsize <= budget]
    return fitting[-1] if fitting else cands[0]


def conv2d_k3_s2_p1(x_nchw, weight, bias):
    # weight: (Cout, Cin, 3, 3), bias: (Cout,) -- PyTorch conventions.
    n, c, h, w = x_nchw.shape
    cout = weight.shape[0]
    ho = (h + 2 - 3) // 2 + 1
    wo = (w + 2 - 3) // 2 + 1
    dtype = x_nchw.dtype

    # TODO(synk): fuse im2col into the Pallas kernel (load a padded input row
    # band per grid step, build the 9 taps with static slices); the stride-2
    # column subsampling needs lane-strided loads, so it stays on the XLA side.
    x = jnp.transpose(x_nchw, (0, 2, 3, 1))                          # NHWC
    xp = jnp.pad(x, ((0, 0), (1, 1), (1, 1), (0, 0)))
    cols = [xp[:, kh:kh + 2 * ho:2, kw:kw + 2 * wo:2, :]
            for kh in range(3) for kw in range(3)]
    patches = jnp.stack(cols, axis=3).reshape(n * ho * wo, 9 * c).astype(dtype)
    # Operands stay in the input dtype: a bf16 network automatically gets the
    # fast bf16 MXU path, accumulation is always f32.
    w_mat = jnp.transpose(weight, (2, 3, 1, 0)).reshape(9 * c, cout).astype(dtype)
    b_row = bias.reshape(1, cout)

    m, k = patches.shape
    tm = _pick_tm(m, k, patches.dtype.itemsize)

    out = pl.pallas_call(
        _conv_gemm_kernel,
        out_shape=jax.ShapeDtypeStruct((m, cout), dtype),
        grid=(m // tm,),
        in_specs=[pl.BlockSpec((tm, k), lambda i: (i, 0)),
                  pl.BlockSpec((k, cout), lambda i: (0, 0)),   # VMEM-resident
                  pl.BlockSpec((1, cout), lambda i: (0, 0))],
        out_specs=pl.BlockSpec((tm, cout), lambda i: (i, 0)),
        compiler_params=pltpu.CompilerParams(
            dimension_semantics=("parallel",),
            vmem_limit_bytes=_VMEM_LIMIT),
    )(patches, w_mat, b_row)
    return jnp.transpose(out.reshape(n, ho, wo, cout), (0, 3, 1, 2))  # NCHW


# ----------------------------- Module wrapper -------------------------------

class DownSample:
    def __init__(self, args_type='MaxPooling', channel=None):
        if args_type == 'MaxPooling':
            self._fn = maxpool2d_2x2
        elif args_type == 'Conv' and channel is not None:
            # Deterministic synthetic init (PyTorch-like uniform bounds).
            k1, k2 = jax.random.split(jax.random.PRNGKey(42))
            fan_in = channel * 3 * 3
            bound = 1.0 / (fan_in ** 0.5)
            self.weight = jax.random.uniform(
                k1, (channel, channel, 3, 3), jnp.float32, -bound, bound)
            self.bias = jax.random.uniform(
                k2, (channel,), jnp.float32, -bound, bound)
            self._fn = lambda x: conv2d_k3_s2_p1(x, self.weight, self.bias)
        else:
            raise AssertionError('Please specify the correct Down_Sample type.')

    def __call__(self, x):
        return self._fn(x)


# --------------------------------- Demo -------------------------------------

if __name__ == "__main__":
    key = jax.random.PRNGKey(0)
    x = jax.random.normal(key, (2, 4, 16, 16), dtype=jnp.float32)   # NCHW

    # --- MaxPooling mode (module default) ---
    mp = DownSample('MaxPooling')
    y_mp = jax.block_until_ready(mp(x))
    ref_mp = lax.reduce_window(x, -jnp.inf, lax.max,
                               (1, 1, 2, 2), (1, 1, 2, 2), 'VALID')
    assert y_mp.shape == (2, 4, 8, 8)
    assert jnp.allclose(y_mp, ref_mp, atol=1e-6), "maxpool mismatch"

    # --- Conv mode ---
    cv = DownSample('Conv', channel=4)
    y_cv = jax.block_until_ready(cv(x))
    ref_cv = lax.conv_general_dilated(
        x, cv.weight, window_strides=(2, 2), padding=((1, 1), (1, 1)),
        dimension_numbers=('NCHW', 'OIHW', 'NCHW'))
    ref_cv = ref_cv + cv.bias[None, :, None, None]
    assert y_cv.shape == (2, 4, 8, 8)
    assert jnp.allclose(y_cv, ref_cv, atol=1e-4, rtol=1e-4), "conv mismatch"

    print("KERNEL_OK")
</pallas_src>

<mosaic_0001>
module attributes {stable_mosaic.version = 11 : i64} {
  func.func @_maxpool_kernel(%arg0: i32, %arg1: i32, %arg2: memref<8x8x2x8x2xf32, #tpu.memory_space<vmem>>, %arg3: memref<8x8x8xf32, #tpu.memory_space<vmem>>) attributes {dimension_semantics = [#tpu.dimension_semantics<parallel>, #tpu.dimension_semantics<parallel>], iteration_bounds = array<i64: 1, 1>, scalar_prefetch = 0 : i64, scratch_operands = 0 : i64, tpu.core_type = #tpu.core_type<tc>, window_params = [{transform_indices = @transform_0, window_bounds = array<i64: 8, 8, 2, 8, 2>}, {transform_indices = @transform_1, window_bounds = array<i64: 8, 8, 8>}]} {
    %c0 = arith.constant 0 : index
    %c0_0 = arith.constant 0 : index
    %c0_1 = arith.constant 0 : index
    %c0_2 = arith.constant 0 : index
    %c0_3 = arith.constant 0 : index
    %0 = vector.load %arg2[%c0, %c0_0, %c0_1, %c0_2, %c0_3] : memref<8x8x2x8x2xf32, #tpu.memory_space<vmem>>, vector<8x8x2x8x2xf32>
    %1 = vector.extract_strided_slice %0 {offsets = [0, 0, 0, 0, 0], sizes = [8, 8, 1, 8, 2], strides = [1, 1, 1, 1, 1]} : vector<8x8x2x8x2xf32> to vector<8x8x1x8x2xf32>
    %2 = vector.shape_cast %1 : vector<8x8x1x8x2xf32> to vector<8x8x8x2xf32>
    %3 = vector.extract_strided_slice %0 {offsets = [0, 0, 1, 0, 0], sizes = [8, 8, 1, 8, 2], strides = [1, 1, 1, 1, 1]} : vector<8x8x2x8x2xf32> to vector<8x8x1x8x2xf32>
    %4 = vector.shape_cast %3 : vector<8x8x1x8x2xf32> to vector<8x8x8x2xf32>
    %5 = arith.maximumf %2, %4 : vector<8x8x8x2xf32>
    %cst = arith.constant dense<0xFF800000> : vector<8x8x8xf32>
    %6 = vector.multi_reduction <maximumf>, %5, %cst [3] : vector<8x8x8x2xf32> to vector<8x8x8xf32>
    %c0_4 = arith.constant 0 : index
    %c0_5 = arith.constant 0 : index
    %c0_6 = arith.constant 0 : index
    %7 = vector.load %arg3[%c0_4, %c0_5, %c0_6] : memref<8x8x8xf32, #tpu.memory_space<vmem>>, vector<8x8x8xf32>
    tpu.vector_store %arg3[%c0_4, %c0_5, %c0_6], %6 {strides = array<i32>} : memref<8x8x8xf32, #tpu.memory_space<vmem>>, vector<8x8x8xf32>,
    return
  }
  func.func @transform_0(%arg0: i32, %arg1: i32) -> (i32, i32, i32, i32, i32) {
    %c0_i32 = arith.constant 0 : i32
    %c0_i32_0 = arith.constant 0 : i32
    %c0_i32_1 = arith.constant 0 : i32
    %c0_i32_2 = arith.constant 0 : i32
    return %arg0, %arg1, %c0_i32, %c0_i32_0, %c0_i32_1 : i32, i32, i32, i32, i32
  }
  func.func @transform_1(%arg0: i32, %arg1: i32) -> (i32, i32, i32) {
    %c0_i32 = arith.constant 0 : i32
    %c0_i32_0 = arith.constant 0 : i32
    return %arg0, %arg1, %c0_i32 : i32, i32, i32
  }
}

</mosaic_0001>

<bundles_post_ra>
// kernel: tpu_custom_call.1
= control target key start
LH: loop header
LB: loop body
LE: loop exit
PB: predicated region body
PF: predicated region fallthrough
CT: control target
= control target key end

     0   :  { %vm201_vm0 = vcmask 15360   ;;  %s1478_s0 = inlined_call_operand.vmem [shape: f32[8,8,2,8,2], index: 0, kind: input, shape index: {}]   ;;  %s1479_s1 = inlined_call_operand.hbm [shape: f32[8,8,8], index: 1, kind: output, shape index: {}]  }
   0x1   :  { %v13_v0 = vld [vmem:[%s1478_s0 + $0x20] sm:$0xff]  ;;  %v14_v1 = vld [vmem:[%s1478_s0 + $0x28] sm:$0xff]  ;;  %v15_v5 = vld [vmem:[%s1478_s0 + $0x30] sm:$0xff] }
   0x2   :  { %v9_v2 = vld [vmem:[%s1478_s0] sm:$0xff]  ;;  %v139_v3 = vmax.f32 %v13_v0, %v14_v1  ;;  %v10_v4 = vld [vmem:[%s1478_s0 + $0x8] sm:$0xff]  ;;  %v16_v6 = vld [vmem:[%s1478_s0 + $0x38] sm:$0xff] }
   0x3   :  { %v137_v7 = vmax.f32 %v9_v2, %v10_v4  ;;  %v140_v8 = vmax.f32 %v15_v5, %v16_v6  ;;  %v11_v9 = vld [vmem:[%s1478_s0 + $0x10] sm:$0xff]  ;;  %v12_v10 = vld [vmem:[%s1478_s0 + $0x18] sm:$0xff]  ;;  %v17_v15 = vld [vmem:[%s1478_s0 + $0x40] sm:$0xff] }
   0x4   :  { %v19_v11 = vld [vmem:[%s1478_s0 + $0x50] sm:$0xff]  ;;  %v208_v12 = vsel %vm201_vm0, %v139_v3, -inf  ;;  %v138_v13 = vmax.f32 %v11_v9, %v12_v10  ;;  %v20_v14 = vld [vmem:[%s1478_s0 + $0x58] sm:$0xff]  ;;  %v18_v16 = vld [vmem:[%s1478_s0 + $0x48] sm:$0xff] }
   0x5   :  { %209 = vmax.xlane.f32.xlu1 %v208_v12  ;;  %v202_v17 = vsel %vm201_vm0, %v137_v7, -inf  ;;  %v211_v18 = vsel %vm201_vm0, %v140_v8, -inf  ;;  %v142_v19 = vmax.f32 %v19_v11, %v20_v14  ;;  %v141_v21 = vmax.f32 %v17_v15, %v18_v16  ;;  %v23_v22 = vld [vmem:[%s1478_s0 + $0x70] sm:$0xff]  ;;  %v24_v23 = vld [vmem:[%s1478_s0 + $0x78] sm:$0xff]  ;;  %v21_v24 = vld [vmem:[%s1478_s0 + $0x60] sm:$0xff] }
   0x6   :  { %203 = vmax.xlane.f32.xlu0 %v202_v17  ;;  %v205_v20 = vsel %vm201_vm0, %v138_v13, -inf  ;;  %v22_v25 = vld [vmem:[%s1478_s0 + $0x68] sm:$0xff]  ;;  %v144_v27 = vmax.f32 %v23_v22, %v24_v23  ;;  %v27_v30 = vld [vmem:[%s1478_s0 + $0x90] sm:$0xff]  ;;  %v28_v31 = vld [vmem:[%s1478_s0 + $0x98] sm:$0xff] }
   0x7   :  { %v217_v26 = vsel %vm201_vm0, %v142_v19, -inf  ;;  %v214_v28 = vsel %vm201_vm0, %v141_v21, -inf  ;;  %v143_v29 = vmax.f32 %v21_v24, %v22_v25  ;;  %v25_v32 = vld [vmem:[%s1478_s0 + $0x80] sm:$0xff]  ;;  %v26_v33 = vld [vmem:[%s1478_s0 + $0x88] sm:$0xff]  ;;  %v146_v35 = vmax.f32 %v27_v30, %v28_v31  ;;  %v31_v38 = vld [vmem:[%s1478_s0 + $0xb0] sm:$0xff] }
   0x8   :  { %v223_v34 = vsel %vm201_vm0, %v144_v27, -inf  ;;  %v145_v37 = vmax.f32 %v25_v32, %v26_v33  ;;  %v32_v39 = vld [vmem:[%s1478_s0 + $0xb8] sm:$0xff]  ;;  %v29_v40 = vld [vmem:[%s1478_s0 + $0xa0] sm:$0xff]  ;;  %v30_v41 = vld [vmem:[%s1478_s0 + $0xa8] sm:$0xff] }
   0x9   :  { %212 = vmax.xlane.f32.xlu1 %v211_v18  ;;  %v220_v36 = vsel %vm201_vm0, %v143_v29, -inf  ;;  %v229_v42 = vsel %vm201_vm0, %v146_v35, -inf  ;;  %v148_v43 = vmax.f32 %v31_v38, %v32_v39  ;;  %v147_v45 = vmax.f32 %v29_v40, %v30_v41  ;;  %v35_v46 = vld [vmem:[%s1478_s0 + $0xd0] sm:$0xff]  ;;  %v36_v47 = vld [vmem:[%s1478_s0 + $0xd8] sm:$0xff]  ;;  %v33_v48 = vld [vmem:[%s1478_s0 + $0xc0] sm:$0xff] }
   0xa   :  { %206 = vmax.xlane.f32.xlu0 %v205_v20  ;;  %v226_v44 = vsel %vm201_vm0, %v145_v37, -inf  ;;  %v34_v49 = vld [vmem:[%s1478_s0 + $0xc8] sm:$0xff]  ;;  %v150_v51 = vmax.f32 %v35_v46, %v36_v47  ;;  %v39_v54 = vld [vmem:[%s1478_s0 + $0xf0] sm:$0xff]  ;;  %v40_v55 = vld [vmem:[%s1478_s0 + $0xf8] sm:$0xff] }
   0xb   :  { %v235_v50 = vsel %vm201_vm0, %v148_v43, -inf  ;;  %v232_v52 = vsel %vm201_vm0, %v147_v45, -inf  ;;  %v149_v53 = vmax.f32 %v33_v48, %v34_v49  ;;  %v37_v56 = vld [vmem:[%s1478_s0 + $0xe0] sm:$0xff]  ;;  %v38_v57 = vld [vmem:[%s1478_s0 + $0xe8] sm:$0xff]  ;;  %v152_v59 = vmax.f32 %v39_v54, %v40_v55  ;;  %v43_v62 = vld [vmem:[%s1478_s0 + $0x110] sm:$0xff] }
   0xc   :  { %v241_v58 = vsel %vm201_vm0, %v150_v51, -inf  ;;  %v151_v61 = vmax.f32 %v37_v56, %v38_v57  ;;  %v44_v63 = vld [vmem:[%s1478_s0 + $0x118] sm:$0xff]  ;;  %v41_v0 = vld [vmem:[%s1478_s0 + $0x100] sm:$0xff]  ;;  %v42_v1 = vld [vmem:[%s1478_s0 + $0x108] sm:$0xff] }
   0xd   :  { %218 = vmax.xlane.f32.xlu1 %v217_v26  ;;  %v238_v60 = vsel %vm201_vm0, %v149_v53, -inf  ;;  %v247_v2 = vsel %vm201_vm0, %v152_v59, -inf  ;;  %v154_v3 = vmax.f32 %v43_v62, %v44_v63  ;;  %v153_v5 = vmax.f32 %v41_v0, %v42_v1  ;;  %v47_v6 = vld [vmem:[%s1478_s0 + $0x130] sm:$0xff]  ;;  %v48_v7 = vld [vmem:[%s1478_s0 + $0x138] sm:$0xff]  ;;  %v45_v8 = vld [vmem:[%s1478_s0 + $0x120] sm:$0xff] }
   0xe   :  { %215 = vmax.xlane.f32.xlu0 %v214_v28  ;;  %v244_v4 = vsel %vm201_vm0, %v151_v61, -inf  ;;  %v46_v9 = vld [vmem:[%s1478_s0 + $0x128] sm:$0xff]  ;;  %v156_v11 = vmax.f32 %v47_v6, %v48_v7  ;;  %v51_v14 = vld [vmem:[%s1478_s0 + $0x150] sm:$0xff]  ;;  %v52_v15 = vld [vmem:[%s1478_s0 + $0x158] sm:$0xff] }
   0xf   :  { %v253_v10 = vsel %vm201_vm0, %v154_v3, -inf  ;;  %v250_v12 = vsel %vm201_vm0, %v153_v5, -inf  ;;  %v155_v13 = vmax.f32 %v45_v8, %v46_v9  ;;  %v49_v16 = vld [vmem:[%s1478_s0 + $0x140] sm:$0xff]  ;;  %v50_v17 = vld [vmem:[%s1478_s0 + $0x148] sm:$0xff]  ;;  %v158_v19 = vmax.f32 %v51_v14, %v52_v15 }
  0x10   :  { %v259_v18 = vsel %vm201_vm0, %v156_v11, -inf  ;;  %v157_v21 = vmax.f32 %v49_v16, %v50_v17  ;;  %v57_v22 = vld [vmem:[%s1478_s0 + $0x180] sm:$0xff]  ;;  %v58_v23 = vld [vmem:[%s1478_s0 + $0x188] sm:$0xff] }
  0x11   :  { %224 = vmax.xlane.f32.xlu1 %v223_v34  ;;  %v256_v20 = vsel %vm201_vm0, %v155_v13, -inf  ;;  %v53_v24 = vld [vmem:[%s1478_s0 + $0x160] sm:$0xff]  ;;  %v54_v25 = vld [vmem:[%s1478_s0 + $0x168] sm:$0xff]  ;;  %v265_v26 = vsel %vm201_vm0, %v158_v19, -inf  ;;  %v161_v27 = vmax.f32 %v57_v22, %v58_v23 }
  0x12   :  { %221 = vmax.xlane.f32.xlu0 %v220_v36  ;;  %v262_v28 = vsel %vm201_vm0, %v157_v21, -inf  ;;  %v159_v29 = vmax.f32 %v53_v24, %v54_v25  ;;  %v73_v30 = vld [vmem:[%s1478_s0 + $0x200] sm:$0xff]  ;;  %v74_v31 = vld [vmem:[%s1478_s0 + $0x208] sm:$0xff] }
  0x15   :  { %230 = vmax.xlane.f32.xlu1 %v229_v42 }
  0x16   :  { %227 = vmax.xlane.f32.xlu0 %v226_v44 }
  0x19   :  { %236 = vmax.xlane.f32.xlu1 %v235_v50 }
  0x1a   :  { %233 = vmax.xlane.f32.xlu0 %v232_v52 }
  0x1d   :  { %242 = vmax.xlane.f32.xlu1 %v241_v58 }
  0x1e   :  { %239 = vmax.xlane.f32.xlu0 %v238_v60 }
  0x21   :  { %248 = vmax.xlane.f32.xlu1 %v247_v2 }
  0x22   :  { %245 = vmax.xlane.f32.xlu0 %v244_v4 }
  0x25   :  { %254 = vmax.xlane.f32.xlu1 %v253_v10 }
  0x26   :  { %251 = vmax.xlane.f32.xlu0 %v250_v12 }
  0x29   :  { %260 = vmax.xlane.f32.xlu1 %v259_v18 }
  0x2a   :  { %257 = vmax.xlane.f32.xlu0 %v256_v20 }
  0x2b   :  { %6 = vsyncpa [#allocation3], 0  ;;  %v59_v32 = vld [vmem:[%s1478_s0 + $0x190] sm:$0xff]  ;;  %v60_v33 = vld [vmem:[%s1478_s0 + $0x198] sm:$0xff]  ;;  %v274_v34 = vsel %vm201_vm0, %v161_v27, -inf  ;;  %v169_v35 = vmax.f32 %v73_v30, %v74_v31  ;;  %v268_v36 = vsel %vm201_vm0, %v159_v29, -inf }
  0x2c   :  { %v162_v37 = vmax.f32 %v59_v32, %v60_v33  ;;  %v89_v38 = vld [vmem:[%s1478_s0 + $0x280] sm:$0xff]  ;;  %v90_v39 = vld [vmem:[%s1478_s0 + $0x288] sm:$0xff]  ;;  %v75_v40 = vld [vmem:[%s1478_s0 + $0x210] sm:$0xff]  ;;  %vm716_vm1 = vcmask 1041409   ;;  %vm718_vm2 = vcmask 1042434   ;;  %vm720_vm3 = vcmask 1043459  }
  0x2d   :  { %266 = vmax.xlane.f32.xlu1 %v265_v26  ;;  %v76_v41 = vld [vmem:[%s1478_s0 + $0x218] sm:$0xff]  ;;  %v298_v42 = vsel %vm201_vm0, %v169_v35, -inf  ;;  %v177_v43 = vmax.f32 %v89_v38, %v90_v39  ;;  %v105_v46 = vld [vmem:[%s1478_s0 + $0x300] sm:$0xff]  ;;  %v106_v47 = vld [vmem:[%s1478_s0 + $0x308] sm:$0xff]  ;;  %vm722_vm4 = vcmask 1044484   ;;  %vm724_vm5 = vcmask 1045509  }
  0x2e   :  { %263 = vmax.xlane.f32.xlu0 %v262_v28  ;;  %v277_v44 = vsel %vm201_vm0, %v162_v37, -inf  ;;  %v170_v45 = vmax.f32 %v75_v40, %v76_v41  ;;  %v91_v48 = vld [vmem:[%s1478_s0 + $0x290] sm:$0xff]  ;;  %v92_v49 = vld [vmem:[%s1478_s0 + $0x298] sm:$0xff]  ;;  %v185_v51 = vmax.f32 %v105_v46, %v106_v47  ;;  %v121_v54 = vld [vmem:[%s1478_s0 + $0x380] sm:$0xff]  ;;  %vm726_vm6 = vcmask 1046534  }
  0x2f   :  { %v322_v50 = vsel %vm201_vm0, %v177_v43, -inf  ;;  %v178_v53 = vmax.f32 %v91_v48, %v92_v49  ;;  %v122_v55 = vld [vmem:[%s1478_s0 + $0x388] sm:$0xff]  ;;  %v107_v56 = vld [vmem:[%s1478_s0 + $0x310] sm:$0xff]  ;;  %v108_v57 = vld [vmem:[%s1478_s0 + $0x318] sm:$0xff]  ;;  %vm728_vm7 = vcmask 1047559   ;;  %vm787_vm8 = vcmask 64512  }
  0x30   :  { %v301_v52 = vsel %vm201_vm0, %v170_v45, -inf  ;;  %v346_v58 = vsel %vm201_vm0, %v185_v51, -inf  ;;  %v193_v59 = vmax.f32 %v121_v54, %v122_v55  ;;  %v186_v61 = vmax.f32 %v107_v56, %v108_v57  ;;  %v61_v62 = vld [vmem:[%s1478_s0 + $0x1a0] sm:$0xff]  ;;  %v62_v63 = vld [vmem:[%s1478_s0 + $0x1a8] sm:$0xff]  ;;  %v123_v0 = vld [vmem:[%s1478_s0 + $0x390] sm:$0xff] }
  0x31   :  { %275 = vmax.xlane.f32.xlu1 %v274_v34  ;;  %v325_v60 = vsel %vm201_vm0, %v178_v53, -inf  ;;  %v124_v1 = vld [vmem:[%s1478_s0 + $0x398] sm:$0xff]  ;;  %v163_v3 = vmax.f32 %v61_v62, %v62_v63  ;;  %v93_v6 = vld [vmem:[%s1478_s0 + $0x2a0] sm:$0xff]  ;;  %v94_v7 = vld [vmem:[%s1478_s0 + $0x2a8] sm:$0xff] }
  0x32   :  { %269 = vmax.xlane.f32.xlu0 %v268_v36  ;;  %v370_v2 = vsel %vm201_vm0, %v193_v59, -inf  ;;  %v349_v4 = vsel %vm201_vm0, %v186_v61, -inf  ;;  %v194_v5 = vmax.f32 %v123_v0, %v124_v1  ;;  %v77_v8 = vld [vmem:[%s1478_s0 + $0x220] sm:$0xff]  ;;  %v78_v9 = vld [vmem:[%s1478_s0 + $0x228] sm:$0xff]  ;;  %v179_v11 = vmax.f32 %v93_v6, %v94_v7  ;;  %v79_v22 = vld [vmem:[%s1478_s0 + $0x230] sm:$0xff] }
  0x33   :  { %v280_v10 = vsel %vm201_vm0, %v163_v3, -inf  ;;  %v171_v13 = vmax.f32 %v77_v8, %v78_v9  ;;  %v125_v14 = vld [vmem:[%s1478_s0 + $0x3a0] sm:$0xff]  ;;  %v126_v15 = vld [vmem:[%s1478_s0 + $0x3a8] sm:$0xff]  ;;  %v80_v23 = vld [vmem:[%s1478_s0 + $0x238] sm:$0xff] }
  0x34   :  { %v373_v12 = vsel %vm201_vm0, %v194_v5, -inf  ;;  %v109_v16 = vld [vmem:[%s1478_s0 + $0x320] sm:$0xff]  ;;  %v110_v17 = vld [vmem:[%s1478_s0 + $0x328] sm:$0xff]  ;;  %v328_v18 = vsel %vm201_vm0, %v179_v11, -inf  ;;  %v195_v19 = vmax.f32 %v125_v14, %v126_v15  ;;  %v63_v24 = vld [vmem:[%s1478_s0 + $0x1b0] sm:$0xff]  ;;  %v172_v27 = vmax.f32 %v79_v22, %v80_v23 }
  0x35   :  { %299 = vmax.xlane.f32.xlu1 %v298_v42  ;;  %v304_v20 = vsel %vm201_vm0, %v171_v13, -inf  ;;  %v187_v21 = vmax.f32 %v109_v16, %v110_v17  ;;  %v64_v25 = vld [vmem:[%s1478_s0 + $0x1b8] sm:$0xff]  ;;  %v111_v30 = vld [vmem:[%s1478_s0 + $0x330] sm:$0xff]  ;;  %v65_v38 = vld [vmem:[%s1478_s0 + $0x1c0] sm:$0xff] }
  0x36   :  { %278 = vmax.xlane.f32.xlu0 %v277_v44  ;;  %v376_v26 = vsel %vm201_vm0, %v195_v19, -inf  ;;  %v164_v29 = vmax.f32 %v63_v24, %v64_v25  ;;  %v112_v31 = vld [vmem:[%s1478_s0 + $0x338] sm:$0xff]  ;;  %v95_v32 = vld [vmem:[%s1478_s0 + $0x2b0] sm:$0xff]  ;;  %v307_v34 = vsel %vm201_vm0, %v172_v27, -inf  ;;  %v66_v39 = vld [vmem:[%s1478_s0 + $0x1c8] sm:$0xff] }
  0x37   :  { %v352_v28 = vsel %vm201_vm0, %v187_v21, -inf  ;;  %v96_v33 = vld [vmem:[%s1478_s0 + $0x2b8] sm:$0xff]  ;;  %v188_v35 = vmax.f32 %v111_v30, %v112_v31  ;;  %v127_v40 = vld [vmem:[%s1478_s0 + $0x3b0] sm:$0xff]  ;;  %v165_v43 = vmax.f32 %v65_v38, %v66_v39  ;;  %v97_v46 = vld [vmem:[%s1478_s0 + $0x2c0] sm:$0xff] }
  0x38   :  { %v283_v36 = vsel %vm201_vm0, %v164_v29, -inf  ;;  %v180_v37 = vmax.f32 %v95_v32, %v96_v33  ;;  %v128_v41 = vld [vmem:[%s1478_s0 + $0x3b8] sm:$0xff]  ;;  %v98_v47 = vld [vmem:[%s1478_s0 + $0x2c8] sm:$0xff]  ;;  %v81_v48 = vld [vmem:[%s1478_s0 + $0x240] sm:$0xff] }
  0x39   :  { %323 = vmax.xlane.f32.xlu1 %v322_v50  ;;  %v355_v42 = vsel %vm201_vm0, %v188_v35, -inf  ;;  %v196_v45 = vmax.f32 %v127_v40, %v128_v41  ;;  %v82_v49 = vld [vmem:[%s1478_s0 + $0x248] sm:$0xff]  ;;  %v286_v50 = vsel %vm201_vm0, %v165_v43, -inf  ;;  %v181_v51 = vmax.f32 %v97_v46, %v98_v47  ;;  %v129_v54 = vld [vmem:[%s1478_s0 + $0x3c0] sm:$0xff]  ;;  %v83_v62 = vld [vmem:[%s1478_s0 + $0x250] sm:$0xff] }
  0x3a   :  { %302 = vmax.xlane.f32.xlu0 %v301_v52  ;;  %v331_v44 = vsel %vm201_vm0, %v180_v37, -inf  ;;  %v173_v53 = vmax.f32 %v81_v48, %v82_v49  ;;  %v130_v55 = vld [vmem:[%s1478_s0 + $0x3c8] sm:$0xff]  ;;  %v113_v56 = vld [vmem:[%s1478_s0 + $0x340] sm:$0xff]  ;;  %v84_v63 = vld [vmem:[%s1478_s0 + $0x258] sm:$0xff] }
  0x3b   :  { %v379_v52 = vsel %vm201_vm0, %v196_v45, -inf  ;;  %v114_v57 = vld [vmem:[%s1478_s0 + $0x348] sm:$0xff]  ;;  %v197_v59 = vmax.f32 %v129_v54, %v130_v55  ;;  %v67_v0 = vld [vmem:[%s1478_s0 + $0x1d0] sm:$0xff]  ;;  %v68_v1 = vld [vmem:[%s1478_s0 + $0x1d8] sm:$0xff]  ;;  %v174_v3 = vmax.f32 %v83_v62, %v84_v63 }
  0x3c   :  { %v189_v61 = vmax.f32 %v113_v56, %v114_v57  ;;  %v166_v5 = vmax.f32 %v67_v0, %v68_v1  ;;  %v115_v6 = vld [vmem:[%s1478_s0 + $0x350] sm:$0xff]  ;;  %v116_v7 = vld [vmem:[%s1478_s0 + $0x358] sm:$0xff]  ;;  %v69_v14 = vld [vmem:[%s1478_s0 + $0x1e0] sm:$0xff]  ;;  %v458_v0 = vlaneseq }
  0x3d   :  { %347 = vmax.xlane.f32.xlu1 %v346_v58  ;;  %v334_v58 = vsel %vm201_vm0, %v181_v51, -inf  ;;  %v99_v8 = vld [vmem:[%s1478_s0 + $0x2d0] sm:$0xff]  ;;  %v100_v9 = vld [vmem:[%s1478_s0 + $0x2d8] sm:$0xff]  ;;  %v190_v11 = vmax.f32 %v115_v6, %v116_v7  ;;  %v70_v15 = vld [vmem:[%s1478_s0 + $0x1e8] sm:$0xff] }
  0x3e   :  { %326 = vmax.xlane.f32.xlu0 %v325_v60  ;;  %v310_v60 = vsel %vm201_vm0, %v173_v53, -inf  ;;  %v182_v13 = vmax.f32 %v99_v8, %v100_v9  ;;  %v131_v16 = vld [vmem:[%s1478_s0 + $0x3d0] sm:$0xff]  ;;  %v132_v17 = vld [vmem:[%s1478_s0 + $0x3d8] sm:$0xff]  ;;  %v167_v19 = vmax.f32 %v69_v14, %v70_v15  ;;  %v101_v22 = vld [vmem:[%s1478_s0 + $0x2e0] sm:$0xff]  ;;  %v459_v1 = vand.u32 127, %v458_v0 }
  0x3f   :  { %v198_v21 = vmax.f32 %v131_v16, %v132_v17  ;;  %v102_v23 = vld [vmem:[%s1478_s0 + $0x2e8] sm:$0xff]  ;;  %v85_v24 = vld [vmem:[%s1478_s0 + $0x260] sm:$0xff]  ;;  %v71_v38 = vld [vmem:[%s1478_s0 + $0x1f0] sm:$0xff] }
  0x40   :  { %v86_v25 = vld [vmem:[%s1478_s0 + $0x268] sm:$0xff]  ;;  %v183_v27 = vmax.f32 %v101_v22, %v102_v23  ;;  %v133_v30 = vld [vmem:[%s1478_s0 + $0x3e0] sm:$0xff]  ;;  %v72_v39 = vld [vmem:[%s1478_s0 + $0x1f8] sm:$0xff] }
  0x41   :  { %371 = vmax.xlane.f32.xlu1 %v370_v2  ;;  %v382_v2 = vsel %vm201_vm0, %v197_v59, -inf  ;;  %v175_v29 = vmax.f32 %v85_v24, %v86_v25  ;;  %v134_v31 = vld [vmem:[%s1478_s0 + $0x3e8] sm:$0xff]  ;;  %v117_v32 = vld [vmem:[%s1478_s0 + $0x360] sm:$0xff]  ;;  %v55_v40 = vld [vmem:[%s1478_s0 + $0x170] sm:$0xff]  ;;  %v168_v43 = vmax.f32 %v71_v38, %v72_v39 }
  0x42   :  { %350 = vmax.xlane.f32.xlu0 %v349_v4  ;;  %v358_v4 = vsel %vm201_vm0, %v189_v61, -inf  ;;  %v118_v33 = vld [vmem:[%s1478_s0 + $0x368] sm:$0xff]  ;;  %v199_v35 = vmax.f32 %v133_v30, %v134_v31  ;;  %v56_v41 = vld [vmem:[%s1478_s0 + $0x178] sm:$0xff]  ;;  %v103_v46 = vld [vmem:[%s1478_s0 + $0x2f0] sm:$0xff] }
  0x43   :  { %v191_v37 = vmax.f32 %v117_v32, %v118_v33  ;;  %v160_v45 = vmax.f32 %v55_v40, %v56_v41  ;;  %v104_v47 = vld [vmem:[%s1478_s0 + $0x2f8] sm:$0xff]  ;;  %v87_v48 = vld [vmem:[%s1478_s0 + $0x270] sm:$0xff] }
  0x44   :  { %v88_v49 = vld [vmem:[%s1478_s0 + $0x278] sm:$0xff]  ;;  %v184_v51 = vmax.f32 %v103_v46, %v104_v47  ;;  %v135_v54 = vld [vmem:[%s1478_s0 + $0x3f0] sm:$0xff] }
  0x45   :  { %281 = vmax.xlane.f32.xlu1 %v280_v10  ;;  %v313_v10 = vsel %vm201_vm0, %v174_v3, -inf  ;;  %v176_v53 = vmax.f32 %v87_v48, %v88_v49  ;;  %v136_v55 = vld [vmem:[%s1478_s0 + $0x3f8] sm:$0xff]  ;;  %v119_v56 = vld [vmem:[%s1478_s0 + $0x370] sm:$0xff] }
  0x46   :  { %374 = vmax.xlane.f32.xlu0 %v373_v12  ;;  %v289_v12 = vsel %vm201_vm0, %v166_v5, -inf  ;;  %v120_v57 = vld [vmem:[%s1478_s0 + $0x378] sm:$0xff]  ;;  %v200_v59 = vmax.f32 %v135_v54, %v136_v55  ;;  %s839_s0 = smov [#allocation2]  }
  0x47   :  { %v192_v61 = vmax.f32 %v119_v56, %v120_v57  ;;  %s801_s30 = sshll.u32 %s839_s0, 4  ;;  %s802_s30 = int_to_ptr.vmem [resolvable:$true] %s801_s30 }
  0x48   :  { %v391_v62 = vsel %vm201_vm0, %v200_v59, -inf  ;;  %s815_s2 = scalar_lea.vmem %s802_s30, 1024  ;;  %p820_p1 = scmp.lt.s32.totalorder %s802_s30, %s802_s30 }
  0x49   :  { %329 = vmax.xlane.f32.xlu1 %v328_v18  ;;  %v361_v18 = vsel %vm201_vm0, %v190_v11, -inf  ;;  %v367_v63 = vsel %vm201_vm0, %v192_v61, -inf  ;;  %p816_p0 = scmp.ne.s32.totalorder %s802_s30, %s815_s2  ;;  %p821_p2 = scmp.lt.s32.totalorder %s815_s2, %s815_s2 }
  0x4a   :  { %305 = vmax.xlane.f32.xlu0 %v304_v20  ;;  %v337_v20 = vsel %vm201_vm0, %v182_v13, -inf }
  0x4b   :  { %p822_p3 = por %p821_p2, %p820_p1 }
  0x4d   :  { %377 = vmax.xlane.f32.xlu1 %v376_v26  ;;  %v292_v26 = vsel %vm201_vm0, %v167_v19, -inf  ;;  %p823_p4 = pnand %p822_p3, %p816_p0 }
  0x4e   :  { %353 = vmax.xlane.f32.xlu0 %v352_v28  ;;  %v385_v28 = vsel %vm201_vm0, %v198_v21, -inf }
  0x51   :  { %308 = vmax.xlane.f32.xlu1 %v307_v34  ;;  %v340_v34 = vsel %vm201_vm0, %v183_v27, -inf }
  0x52   :  { %284 = vmax.xlane.f32.xlu0 %v283_v36  ;;  %v316_v36 = vsel %vm201_vm0, %v175_v29, -inf }
  0x55   :  { %356 = vmax.xlane.f32.xlu1 %v355_v42  ;;  %v388_v42 = vsel %vm201_vm0, %v199_v35, -inf }
  0x56   :  { %332 = vmax.xlane.f32.xlu0 %v331_v44  ;;  %v364_v44 = vsel %vm201_vm0, %v191_v37, -inf }
  0x59   :  { %287 = vmax.xlane.f32.xlu1 %v286_v50  ;;  %v295_v50 = vsel %vm201_vm0, %v168_v43, -inf }
  0x5a   :  { %380 = vmax.xlane.f32.xlu0 %v379_v52  ;;  %v271_v52 = vsel %vm201_vm0, %v160_v45, -inf }
  0x5d   :  { %335 = vmax.xlane.f32.xlu1 %v334_v58  ;;  %v343_v58 = vsel %vm201_vm0, %v184_v51, -inf }
  0x5e   :  { %311 = vmax.xlane.f32.xlu0 %v310_v60  ;;  %v319_v60 = vsel %vm201_vm0, %v176_v53, -inf }
  0x61   :  { %383 = vmax.xlane.f32.xlu1 %v382_v2  ;;  %v461_v2 = vshrl.u32 %v458_v0, 7 }
  0x62   :  { %359 = vmax.xlane.f32.xlu0 %v358_v4 }
  0x63   :  { %v1300_v5 = vsub.s32 %v459_v1, %v461_v2 }
  0x65   :  { %314 = vmax.xlane.f32.xlu1 %v313_v10 }
  0x66   :  { %290 = vmax.xlane.f32.xlu0 %v289_v12 }
  0x69   :  { %362 = vmax.xlane.f32.xlu1 %v361_v18 }
  0x6a   :  { %338 = vmax.xlane.f32.xlu0 %v337_v20 }
  0x6d   :  { %293 = vmax.xlane.f32.xlu1 %v292_v26 }
  0x6e   :  { %386 = vmax.xlane.f32.xlu0 %v385_v28 }
  0x71   :  { %341 = vmax.xlane.f32.xlu1 %v340_v34 }
  0x72   :  { %317 = vmax.xlane.f32.xlu0 %v316_v36 }
  0x75   :  { %389 = vmax.xlane.f32.xlu1 %v388_v42 }
  0x76   :  { %365 = vmax.xlane.f32.xlu0 %v364_v44 }
  0x79   :  { %296 = vmax.xlane.f32.xlu1 %v295_v50 }
  0x7a   :  { %272 = vmax.xlane.f32.xlu0 %v271_v52 }
  0x7d   :  { %344 = vmax.xlane.f32.xlu1 %v343_v58 }
  0x7e   :  { %320 = vmax.xlane.f32.xlu0 %v319_v60 }
  0x81   :  { %392 = vmax.xlane.f32.xlu1 %v391_v62 }
  0x82   :  { %368 = vmax.xlane.f32.xlu0 %v367_v63 }
  0x92   :  { %v210_v3 = vpop.xlane.xlu1 %209 }
  0x93   :  { %v204_v4 = vpop.xlane.xlu0 %203  ;;  %v471_v10 = vrot.slane %v210_v3, %v1300_v5 }
  0x94   :  { %v463_v8 = vrot.slane %v204_v4, %v1300_v5 }
  0x96   :  { %v213_v6 = vpop.xlane.xlu1 %212 }
  0x97   :  { %v207_v7 = vpop.xlane.xlu0 %206  ;;  %v475_v11 = vrot.slane %v213_v6, %v1300_v5 }
  0x98   :  { %v467_v9 = vrot.slane %v207_v7, %v1300_v5 }
  0x9a   :  { %v717_v12 = vsel %vm716_vm1, %v467_v9, %v463_v8  ;;  %v219_v13 = vpop.xlane.xlu1 %218 }
  0x9b   :  { %v719_v14 = vsel %vm718_vm2, %v471_v10, %v717_v12  ;;  %v216_v15 = vpop.xlane.xlu0 %215  ;;  %v483_v18 = vrot.slane %v219_v13, %v1300_v5 }
  0x9c   :  { %v721_v16 = vsel %vm720_vm3, %v475_v11, %v719_v14  ;;  %v479_v17 = vrot.slane %v216_v15, %v1300_v5 }
  0x9e   :  { %v723_v19 = vsel %vm722_vm4, %v479_v17, %v721_v16  ;;  %v225_v20 = vpop.xlane.xlu1 %224 }
  0x9f   :  { %v491_v21 = vrot.slane %v225_v20, %v1300_v5  ;;  %v222_v22 = vpop.xlane.xlu0 %221  ;;  %v725_v24 = vsel %vm724_vm5, %v483_v18, %v723_v19 }
  0xa0   :  { %v487_v23 = vrot.slane %v222_v22, %v1300_v5 }
  0xa2   :  { %v727_v25 = vsel %vm726_vm6, %v487_v23, %v725_v24  ;;  %v231_v26 = vpop.xlane.xlu1 %230 }
  0xa3   :  { %v729_v27 = vsel %vm728_vm7, %v491_v21, %v727_v25  ;;  %v228_v28 = vpop.xlane.xlu0 %227  ;;  %v499_v29 = vrot.slane %v231_v26, %v1300_v5 }
  0xa4   :  { %788 = vst.msk [vmem:[#allocation2] sm:$0xff] %vm787_vm8, %v729_v27  ;;  %v495_v30 = vrot.slane %v228_v28, %v1300_v5 }
  0xa6   :  { %v237_v31 = vpop.xlane.xlu1 %236  ;;  %v730_v34 = vsel %vm716_vm1, %v499_v29, %v495_v30 }
  0xa7   :  { %v234_v32 = vpop.xlane.xlu0 %233  ;;  %v507_v35 = vrot.slane %v237_v31, %v1300_v5 }
  0xa8   :  { %v503_v33 = vrot.slane %v234_v32, %v1300_v5 }
  0xaa   :  { %v731_v36 = vsel %vm718_vm2, %v503_v33, %v730_v34  ;;  %v243_v37 = vpop.xlane.xlu1 %242 }
  0xab   :  { %v240_v38 = vpop.xlane.xlu0 %239  ;;  %v515_v40 = vrot.slane %v243_v37, %v1300_v5  ;;  %v732_v41 = vsel %vm720_vm3, %v507_v35, %v731_v36 }
  0xac   :  { %v511_v39 = vrot.slane %v240_v38, %v1300_v5 }
  0xae   :  { %v733_v42 = vsel %vm722_vm4, %v511_v39, %v732_v41  ;;  %v249_v43 = vpop.xlane.xlu1 %248 }
  0xaf   :  { %v523_v44 = vrot.slane %v249_v43, %v1300_v5  ;;  %v246_v45 = vpop.xlane.xlu0 %245  ;;  %v734_v47 = vsel %vm724_vm5, %v515_v40, %v733_v42 }
  0xb0   :  { %v519_v46 = vrot.slane %v246_v45, %v1300_v5 }
  0xb2   :  { %v735_v48 = vsel %vm726_vm6, %v519_v46, %v734_v47  ;;  %v255_v49 = vpop.xlane.xlu1 %254 }
  0xb3   :  { %v736_v50 = vsel %vm728_vm7, %v523_v44, %v735_v48  ;;  %v531_v51 = vrot.slane %v255_v49, %v1300_v5  ;;  %v252_v52 = vpop.xlane.xlu0 %251 }
  0xb4   :  { %789 = vst.msk [vmem:[#allocation2 + $0x8] sm:$0xff] %vm787_vm8, %v736_v50  ;;  %v527_v53 = vrot.slane %v252_v52, %v1300_v5 }
  0xb6   :  { %v737_v54 = vsel %vm716_vm1, %v531_v51, %v527_v53  ;;  %v261_v55 = vpop.xlane.xlu1 %260 }
  0xb7   :  { %v539_v56 = vrot.slane %v261_v55, %v1300_v5  ;;  %v258_v57 = vpop.xlane.xlu0 %257 }
  0xb8   :  { %v535_v58 = vrot.slane %v258_v57, %v1300_v5 }
  0xba   :  { %v738_v59 = vsel %vm718_vm2, %v535_v58, %v737_v54  ;;  %v267_v60 = vpop.xlane.xlu1 %266 }
  0xbb   :  { %v547_v61 = vrot.slane %v267_v60, %v1300_v5  ;;  %v739_v62 = vsel %vm720_vm3, %v539_v56, %v738_v59  ;;  %v264_v63 = vpop.xlane.xlu0 %263 }
  0xbc   :  { %v543_v0 = vrot.slane %v264_v63, %v1300_v5 }
  0xbe   :  { %v740_v1 = vsel %vm722_vm4, %v543_v0, %v739_v62  ;;  %v276_v2 = vpop.xlane.xlu1 %275 }
  0xbf   :  { %v741_v3 = vsel %vm724_vm5, %v547_v61, %v740_v1  ;;  %v270_v4 = vpop.xlane.xlu0 %269  ;;  %v559_v10 = vrot.slane %v276_v2, %v1300_v5 }
  0xc0   :  { %v551_v6 = vrot.slane %v270_v4, %v1300_v5 }
  0xc2   :  { %v1347_v7 = vsel %vm726_vm6, %v551_v6, %v741_v3  ;;  %v300_v8 = vpop.xlane.xlu1 %299 }
  0xc3   :  { %v279_v9 = vpop.xlane.xlu0 %278  ;;  %v591_v15 = vrot.slane %v300_v8, %v1300_v5 }
  0xc4   :  { %v563_v11 = vrot.slane %v279_v9, %v1300_v5 }
  0xc6   :  { %v744_v12 = vsel %vm716_vm1, %v563_v11, %v559_v10  ;;  %v324_v13 = vpop.xlane.xlu1 %323 }
  0xc7   :  { %v303_v14 = vpop.xlane.xlu0 %302  ;;  %v623_v50 = vrot.slane %v324_v13, %v1300_v5 }
  0xc8   :  { %v595_v16 = vrot.slane %v303_v14, %v1300_v5 }
  0xca   :  { %v751_v17 = vsel %vm716_vm1, %v595_v16, %v591_v15  ;;  %v348_v18 = vpop.xlane.xlu1 %347 }
  0xcb   :  { %v327_v19 = vpop.xlane.xlu0 %326  ;;  %v655_v51 = vrot.slane %v348_v18, %v1300_v5 }
  0xcc   :  { %v627_v44 = vrot.slane %v327_v19, %v1300_v5 }
  0xce   :  { %v372_v20 = vpop.xlane.xlu1 %371  ;;  %v758_v58 = vsel %vm716_vm1, %v627_v44, %v623_v50 }
  0xcf   :  { %v351_v21 = vpop.xlane.xlu0 %350  ;;  %v687_v54 = vrot.slane %v372_v20, %v1300_v5 }
  0xd0   :  { %v659_v46 = vrot.slane %v351_v21, %v1300_v5 }
  0xd2   :  { %v282_v22 = vpop.xlane.xlu1 %281  ;;  %v765_v62 = vsel %vm716_vm1, %v659_v46, %v655_v51 }
  0xd3   :  { %v375_v23 = vpop.xlane.xlu0 %374  ;;  %v567_v47 = vrot.slane %v282_v22, %v1300_v5 }
  0xd4   :  { %v691_v48 = vrot.slane %v375_v23, %v1300_v5 }
  0xd5   :  { %v745_v63 = vsel %vm718_vm2, %v567_v47, %v744_v12 }
  0xd6   :  { %v330_v24 = vpop.xlane.xlu1 %329  ;;  %v772_v0 = vsel %vm716_vm1, %v691_v48, %v687_v54 }
  0xd7   :  { %v306_v25 = vpop.xlane.xlu0 %305  ;;  %v631_v52 = vrot.slane %v330_v24, %v1300_v5 }
  0xd8   :  { %v599_v53 = vrot.slane %v306_v25, %v1300_v5 }
  0xd9   :  { %v759_v3 = vsel %vm718_vm2, %v631_v52, %v758_v58 }
  0xda   :  { %v378_v26 = vpop.xlane.xlu1 %377  ;;  %v752_v4 = vsel %vm718_vm2, %v599_v53, %v751_v17 }
  0xdb   :  { %v354_v27 = vpop.xlane.xlu0 %353  ;;  %v695_v55 = vrot.slane %v378_v26, %v1300_v5 }
  0xdc   :  { %v663_v56 = vrot.slane %v354_v27, %v1300_v5 }
  0xdd   :  { %v773_v9 = vsel %vm718_vm2, %v695_v55, %v772_v0 }
  0xde   :  { %v309_v28 = vpop.xlane.xlu1 %308  ;;  %v766_v10 = vsel %vm718_vm2, %v663_v56, %v765_v62 }
  0xdf   :  { %v285_v29 = vpop.xlane.xlu0 %284  ;;  %v603_v59 = vrot.slane %v309_v28, %v1300_v5 }
  0xe0   :  { %v571_v57 = vrot.slane %v285_v29, %v1300_v5 }
  0xe1   :  { %v753_v13 = vsel %vm720_vm3, %v603_v59, %v752_v4 }
  0xe2   :  { %v1355_v30 = vpop.xlane.xlu1 %356  ;;  %v746_v11 = vsel %vm720_vm3, %v571_v57, %v745_v63 }
  0xe3   :  { %v333_v31 = vpop.xlane.xlu0 %332  ;;  %v667_v14 = vrot.slane %v1355_v30, %v1300_v5 }
  0xe4   :  { %v635_v6 = vrot.slane %v333_v31, %v1300_v5 }
  0xe6   :  { %v288_v32 = vpop.xlane.xlu1 %287  ;;  %v760_v23 = vsel %vm720_vm3, %v635_v6, %v759_v3 }
  0xe7   :  { %v1357_v33 = vpop.xlane.xlu0 %380  ;;  %v575_v60 = vrot.slane %v288_v32, %v1300_v5 }
  0xe8   :  { %v699_v27 = vrot.slane %v1357_v33, %v1300_v5 }
  0xe9   :  { %v747_v15 = vsel %vm722_vm4, %v575_v60, %v746_v11 }
  0xea   :  { %v336_v34 = vpop.xlane.xlu1 %335  ;;  %v774_v46 = vsel %vm720_vm3, %v699_v27, %v773_v9 }
  0xeb   :  { %v312_v35 = vpop.xlane.xlu0 %311  ;;  %v639_v12 = vrot.slane %v336_v34, %v1300_v5 }
  0xec   :  { %v607_v16 = vrot.slane %v312_v35, %v1300_v5 }
  0xed   :  { %v761_v28 = vsel %vm722_vm4, %v639_v12, %v760_v23 }
  0xee   :  { %v1359_v36 = vpop.xlane.xlu1 %383  ;;  %v754_v31 = vsel %vm722_vm4, %v607_v16, %v753_v13 }
  0xef   :  { %v1361_v37 = vpop.xlane.xlu0 %359  ;;  %v703_v32 = vrot.slane %v1359_v36, %v1300_v5 }
  0xf0   :  { %v671_v34 = vrot.slane %v1361_v37, %v1300_v5 }
  0xf2   :  { %v1363_v38 = vpop.xlane.xlu1 %314 }
  0xf3   :  { %v291_v39 = vpop.xlane.xlu0 %290  ;;  %v611_v18 = vrot.slane %v1363_v38, %v1300_v5 }
  0xf4   :  { %v579_v1 = vrot.slane %v291_v39, %v1300_v5 }
  0xf5   :  { %v755_v38 = vsel %vm724_vm5, %v611_v18, %v754_v31 }
  0xf6   :  { %v1365_v40 = vpop.xlane.xlu1 %362  ;;  %v748_v19 = vsel %vm724_vm5, %v579_v1, %v747_v15 }
  0xf7   :  { %v339_v41 = vpop.xlane.xlu0 %338  ;;  %v675_v37 = vrot.slane %v1365_v40, %v1300_v5  ;;  %v767_v40 = vsel %vm720_vm3, %v667_v14, %v766_v10 }
  0xf8   :  { %v643_v20 = vrot.slane %v339_v41, %v1300_v5  ;;  %v768_v52 = vsel %vm722_vm4, %v671_v34, %v767_v40 }
  0xf9   :  { %v769_v56 = vsel %vm724_vm5, %v675_v37, %v768_v52 }
  0xfa   :  { %v294_v42 = vpop.xlane.xlu1 %293  ;;  %v762_v39 = vsel %vm724_vm5, %v643_v20, %v761_v28 }
  0xfb   :  { %v1367_v43 = vpop.xlane.xlu0 %386  ;;  %v583_v8 = vrot.slane %v294_v42, %v1300_v5 }
  0xfc   :  { %v707_v41 = vrot.slane %v1367_v43, %v1300_v5 }
  0xfd   :  { %v749_v24 = vsel %vm726_vm6, %v583_v8, %v748_v19 }
  0xfe   :  { %v1370_v45 = vpop.xlane.xlu1 %341 }
  0xff   :  { %v1375_v49 = vpop.xlane.xlu0 %317  ;;  %v647_v25 = vrot.slane %v1370_v45, %v1300_v5 }
 0x100   :  { %v615_v29 = vrot.slane %v1375_v49, %v1300_v5  ;;  %v775_v49 = vsel %vm722_vm4, %v703_v32, %v774_v46 }
 0x101   :  { %v763_v44 = vsel %vm726_vm6, %v647_v25, %v762_v39  ;;  %v776_v53 = vsel %vm724_vm5, %v707_v41, %v775_v49 }
 0x102   :  { %v1388_v61 = vpop.xlane.xlu1 %389  ;;  %v756_v47 = vsel %vm726_vm6, %v615_v29, %v755_v38 }
 0x103   :  { %v1394_v2 = vpop.xlane.xlu0 %365 }
 0x104   :  { %v679_v43 = vrot.slane %v1394_v2, %v1300_v5 }
 0x106   :  { %v297_v17 = vpop.xlane.xlu1 %296  ;;  %v770_v59 = vsel %vm726_vm6, %v679_v43, %v769_v56 }
 0x107   :  { %v587_v21 = vrot.slane %v297_v17, %v1300_v5  ;;  %v273_v22 = vpop.xlane.xlu0 %272 }
 0x108   :  { %v555_v26 = vrot.slane %v273_v22, %v1300_v5 }
 0x109   :  { %v750_v30 = vsel %vm728_vm7, %v587_v21, %v749_v24 }
 0x10a   :  { %791 = vst.msk [vmem:[#allocation2 + $0x18] sm:$0xff] %vm787_vm8, %v750_v30  ;;  %v743_v33 = vsel %vm728_vm7, %v555_v26, %v1347_v7  ;;  %v345_v35 = vpop.xlane.xlu1 %344  ;;  %v711_v7 = vrot.slane %v1388_v61, %v1300_v5 }
 0x10b   :  { %790 = vst.msk [vmem:[#allocation2 + $0x10] sm:$0xff] %vm787_vm8, %v743_v33  ;;  %v651_v36 = vrot.slane %v345_v35, %v1300_v5  ;;  %v321_v42 = vpop.xlane.xlu0 %320 }
 0x10c   :  { %v619_v45 = vrot.slane %v321_v42, %v1300_v5  ;;  %v777_v57 = vsel %vm726_vm6, %v711_v7, %v776_v53 }
 0x10d   :  { %v764_v48 = vsel %vm728_vm7, %v651_v36, %v763_v44 }
 0x10e   :  { %793 = vst.msk [vmem:[#allocation2 + $0x28] sm:$0xff] %vm787_vm8, %v764_v48  ;;  %v757_v50 = vsel %vm728_vm7, %v619_v45, %v756_v47  ;;  %v393_v51 = vpop.xlane.xlu1 %392 }
 0x10f   :  { %792 = vst.msk [vmem:[#allocation2 + $0x20] sm:$0xff] %vm787_vm8, %v757_v50  ;;  %v715_v54 = vrot.slane %v393_v51, %v1300_v5  ;;  %v369_v55 = vpop.xlane.xlu0 %368 }
 0x110   :  { %v683_v58 = vrot.slane %v369_v55, %v1300_v5 }
 0x111   :  { %v778_v60 = vsel %vm728_vm7, %v715_v54, %v777_v57 }
 0x112   :  { %795 = vst.msk [vmem:[#allocation2 + $0x38] sm:$0xff] %vm787_vm8, %v778_v60  ;;  %v771_v61 = vsel %vm728_vm7, %v683_v58, %v770_v59 }
 0x113   :  { %794 = vst.msk [vmem:[#allocation2 + $0x30] sm:$0xff] %vm787_vm8, %v771_v61 }
 0x114   :  { %826 = shalt.err (!%p823_p4)
}
 0x115   :  { %s827_s5 = scalar_lea.hbm %s1479_s1, 1024 }
 0x116   :  { %p828_p5 = scmp.ne.s32.totalorder %s1479_s1, %s827_s5  ;;  %p831_p6 = scmp.lt.u32.totalorder %s827_s5, %s1479_s1 }
 0x118   :  { %p833_p7 = pnand %p831_p6, %p828_p5 }
 0x11a   :  { %836 = shalt.err (!%p833_p7)
}
 0x11b   :  { %s840_s10 = smov 128   ;;  %s841_s11 = smov 8  }
 0x11c   :  { %807 = dma.vmem_to_hbm [thread:$0]  %s802_s30, 1024, %s1479_s1, [#allocation3], %s840_s10, %s840_s10, %s841_s11  }
 0x11d   :  { %837 = dma.done.wait [#allocation3], 1024  }
 0x11e   :  { %838 = vsyncadd [#allocation3], 4294966272 }
 0x11f   :  { %811 = vsyncpa [#allocation3], 1 }

</bundles_post_ra>
